<compile_context>
chip_gen: v5e
topology: v5e:2x2
jax: 0.10.0
libtpu: 0.0.40
codegen_flags: <defaults>
</compile_context>

<pallas_src>
import jax
import jax.numpy as jnp
from jax.experimental import pallas as pl
from jax.experimental.pallas import tpu as pltpu


# ----------------------------------------------------------------------------
# Fused kernel: conv3x3+ReLU -> GAP -> Linear+ReLU -> Linear, per image block.
# ----------------------------------------------------------------------------
def fused_gradcam_kernel(xcol_ref, wcol_ref, bconv_ref,
                         wemb_ref, bemb_ref, wcls_ref, bcls_ref, o_ref):
    # xcol_ref : (nb, 9*Cin, H*W)  im2col'd input, spatial positions on lanes
    # wcol_ref : (Cout, 9*Cin)     conv weight, (kh,kw,ci)-flattened contraction
    # bconv_ref: (Cout, 1)
    # wemb_ref : (Cout, E)         embedding Linear, already (in, out)
    # bemb_ref : (1, E)
    # wcls_ref : (E, K)            classifier Linear, already (in, out)
    # bcls_ref : (1, K)
    # o_ref    : (nb, 1, K)        class logits
    nb = xcol_ref.shape[0]
    hw = xcol_ref.shape[2]
    inv_hw = 1.0 / float(hw)

    rows = []
    for n in range(nb):  # static unroll; nb is 1 (v7x) or N (v5e/v6e), both tiny
        # conv3x3 (stride 1, pad 1) + bias + ReLU as ONE lane-dense MXU matmul:
        # (Cout, 9*Cin) @ (9*Cin, H*W) -> (Cout, H*W), spatial on the 128 lanes.
        fmap = jnp.dot(wcol_ref[...], xcol_ref[n],
                       preferred_element_type=jnp.float32) + bconv_ref[...]
        fmap = jnp.maximum(fmap, 0.0)

        # global average pool: lane reduction in the native (Cout, H*W) layout.
        pooled = (jnp.sum(fmap, axis=1, keepdims=True) * inv_hw).T      # (1, Cout)

        # embedding: Linear + ReLU
        emb = jnp.dot(pooled, wemb_ref[...],
                      preferred_element_type=jnp.float32) + bemb_ref[...]
        emb = jnp.maximum(emb, 0.0)                                     # (1, E)

        # classifier (eval mode -> plain logits)
        logits = jnp.dot(emb, wcls_ref[...],
                         preferred_element_type=jnp.float32) + bcls_ref[...]
        rows.append(logits)                                             # (1, K)

    o_ref[...] = jnp.stack(rows, axis=0).astype(o_ref.dtype)            # (nb, 1, K)


# ----------------------------------------------------------------------------
# Wrapper glue
# ----------------------------------------------------------------------------
def _im2col_nchw(x_nchw):
    # 3x3 / stride-1 / pad-1 im2col directly from NCHW (no NHWC transpose pass).
    # Row ordering is (kh, kw) outer, channel inner: row = (kh*3 + kw)*Cin + ci.
    N, C, H, W = x_nchw.shape
    xp = jnp.pad(x_nchw, ((0, 0), (0, 0), (1, 1), (1, 1)))
    taps = []
    for kh in range(3):
        for kw in range(3):
            taps.append(xp[:, :, kh:kh + H, kw:kw + W].reshape(N, C, H * W))
    return jnp.concatenate(taps, axis=1)          # (N, 9*C, H*W)


def _batch_block(n_batch):
    # v7x has 2 TensorCores per chip: keep one image per grid step so the
    # "parallel" grid axis is sharded across both cores.  v5e/v6e have a
    # single TC where the grid is a serial loop -> fold the batch into one
    # grid step to pay the per-step overhead once.
    try:
        kind = jax.devices()[0].device_kind.lower()
    except Exception:
        kind = ""
    return 1 if "7" in kind else n_batch


def gradcam_net_forward(x_nchw, params):
    N, Cin, H, W = x_nchw.shape
    w_conv = params["w_conv"]                     # PyTorch Conv2d OIHW: (Cout, Cin, 3, 3)
    Cout = w_conv.shape[0]
    E = params["w_emb"].shape[0]                  # PyTorch Linear: (E, Cout)
    K = params["w_cls"].shape[0]                  # PyTorch Linear: (K, E)
    HW = H * W
    Cfold = 9 * Cin

    # glue: explicit PyTorch -> kernel weight-layout conversions.
    wcol = jnp.transpose(w_conv, (0, 2, 3, 1)).reshape(Cout, Cfold)   # (Cout, 9*Cin)
    bconv = params["b_conv"].reshape(Cout, 1)
    wemb = params["w_emb"].T                      # (Cout, E)
    bemb = params["b_emb"].reshape(1, E)
    wcls = params["w_cls"].T                      # (E, K)
    bcls = params["b_cls"].reshape(1, K)

    xcol = _im2col_nchw(x_nchw)                   # (N, 9*Cin, H*W)

    nb = _batch_block(N)                          # images per grid step

    logits3 = pl.pallas_call(
        fused_gradcam_kernel,
        out_shape=jax.ShapeDtypeStruct((N, 1, K), jnp.float32),
        grid=(N // nb,),
        in_specs=[
            pl.BlockSpec((nb, Cfold, HW), lambda i: (i, 0, 0)),
            pl.BlockSpec((Cout, Cfold), lambda i: (0, 0)),
            pl.BlockSpec((Cout, 1), lambda i: (0, 0)),
            pl.BlockSpec((Cout, E), lambda i: (0, 0)),
            pl.BlockSpec((1, E), lambda i: (0, 0)),
            pl.BlockSpec((E, K), lambda i: (0, 0)),
            pl.BlockSpec((1, K), lambda i: (0, 0)),
        ],
        out_specs=pl.BlockSpec((nb, 1, K), lambda i: (i, 0, 0)),
        compiler_params=pltpu.CompilerParams(
            dimension_semantics=("parallel",)),
    )(xcol, wcol, bconv, wemb, bemb, wcls, bcls)

    # TODO(synk): x.register_hook(self.activations_hook) is an autograd-only
    # side effect (captures d(loss)/d(feature_map) for Grad-CAM) with no
    # forward-pass equivalent; intentionally omitted.
    # TODO(synk): injected `embedding` assumed to be GAP+Linear+ReLU and
    # `classifier(x, None, mode='eval')` assumed to be a plain Linear; verify
    # against the actual injected modules (and self.resnet18 is unused in
    # forward(), so it is not modeled).
    return logits3.reshape(N, K)


def init_params(key, cin=4, cout=8, emb_dim=32, num_classes=10):
    # Parameters are kept in PyTorch layouts (Conv2d OIHW, Linear (out, in));
    # gradcam_net_forward performs the layout conversion explicitly.
    ks = jax.random.split(key, 5)
    s = 0.1
    return {
        "w_conv": s * jax.random.normal(ks[0], (cout, cin, 3, 3), jnp.float32),
        "b_conv": s * jax.random.normal(ks[1], (cout,), jnp.float32),
        "w_emb": s * jax.random.normal(ks[2], (emb_dim, cout), jnp.float32),
        "b_emb": s * jax.random.normal(ks[3], (emb_dim,), jnp.float32),
        "w_cls": s * jax.random.normal(ks[4], (num_classes, emb_dim), jnp.float32),
        "b_cls": jnp.zeros((num_classes,), jnp.float32),
    }


if __name__ == "__main__":
    key = jax.random.PRNGKey(0)
    k_x, k_p = jax.random.split(key)

    # Small deterministic input, PyTorch NCHW convention: (batch, C, H, W)
    x = jax.random.normal(k_x, (2, 4, 16, 16), jnp.float32)
    params = init_params(k_p, cin=4, cout=8, emb_dim=32, num_classes=10)

    fwd = jax.jit(gradcam_net_forward)            # fuses pad/im2col/weight glue
    logits = fwd(x, params)
    jax.block_until_ready(logits)

    assert logits.shape == (2, 10)
    assert logits.dtype == jnp.float32
    print("KERNEL_OK")
</pallas_src>

<mosaic_0001>
module attributes {stable_mosaic.version = 11 : i64} {
  func.func @fused_gradcam_kernel(%arg0: i32, %arg1: memref<2x36x256xf32, #tpu.memory_space<vmem>>, %arg2: memref<8x36xf32, #tpu.memory_space<vmem>>, %arg3: memref<8x1xf32, #tpu.memory_space<vmem>>, %arg4: memref<8x32xf32, #tpu.memory_space<vmem>>, %arg5: memref<1x32xf32, #tpu.memory_space<vmem>>, %arg6: memref<32x10xf32, #tpu.memory_space<vmem>>, %arg7: memref<1x10xf32, #tpu.memory_space<vmem>>, %arg8: memref<2x1x10xf32, #tpu.memory_space<vmem>>) attributes {dimension_semantics = [#tpu.dimension_semantics<parallel>], iteration_bounds = array<i64: 1>, scalar_prefetch = 0 : i64, scratch_operands = 0 : i64, tpu.core_type = #tpu.core_type<tc>, window_params = [{transform_indices = @transform_0, window_bounds = array<i64: 2, 36, 256>}, {pipeline_mode = #tpu.pipeline_mode<synchronous>, transform_indices = @transform_1, window_bounds = array<i64: 8, 36>}, {pipeline_mode = #tpu.pipeline_mode<synchronous>, transform_indices = @transform_2, window_bounds = array<i64: 8, 1>}, {pipeline_mode = #tpu.pipeline_mode<synchronous>, transform_indices = @transform_3, window_bounds = array<i64: 8, 32>}, {pipeline_mode = #tpu.pipeline_mode<synchronous>, transform_indices = @transform_4, window_bounds = array<i64: 1, 32>}, {pipeline_mode = #tpu.pipeline_mode<synchronous>, transform_indices = @transform_5, window_bounds = array<i64: 32, 10>}, {pipeline_mode = #tpu.pipeline_mode<synchronous>, transform_indices = @transform_6, window_bounds = array<i64: 1, 10>}, {transform_indices = @transform_7, window_bounds = array<i64: 2, 1, 10>}]} {
    %c0 = arith.constant 0 : index
    %c0_0 = arith.constant 0 : index
    %0 = vector.load %arg2[%c0, %c0_0] : memref<8x36xf32, #tpu.memory_space<vmem>>, vector<8x36xf32>
    %c0_1 = arith.constant 0 : index
    %c0_2 = arith.constant 0 : index
    %c0_3 = arith.constant 0 : index
    %1 = vector.load %arg1[%c0_1, %c0_2, %c0_3] : memref<2x36x256xf32, #tpu.memory_space<vmem>>, vector<1x36x256xf32>
    %2 = vector.shape_cast %1 : vector<1x36x256xf32> to vector<36x256xf32>
    %cst = arith.constant dense<0.000000e+00> : vector<8x256xf32>
    %3 = tpu.matmul %0, %2, %cst {dimension_numbers = #tpu.dot_dimension_numbers<[1], [0], [0], [1], [0, 0, 1, 1], [], []>} : vector<8x36xf32>, vector<36x256xf32>, vector<8x256xf32> -> vector<8x256xf32>
    %c0_4 = arith.constant 0 : index
    %c0_5 = arith.constant 0 : index
    %4 = vector.load %arg3[%c0_4, %c0_5] : memref<8x1xf32, #tpu.memory_space<vmem>>, vector<8x1xf32>
    %5 = vector.broadcast %4 : vector<8x1xf32> to vector<8x256xf32>
    %6 = arith.addf %3, %5 : vector<8x256xf32>
    %cst_6 = arith.constant 0.000000e+00 : f32
    %7 = vector.broadcast %cst_6 : f32 to vector<8x256xf32>
    %8 = arith.maximumf %6, %7 : vector<8x256xf32>
    %cst_7 = arith.constant dense<0.000000e+00> : vector<8xf32>
    %9 = vector.multi_reduction <add>, %8, %cst_7 [1] : vector<8x256xf32> to vector<8xf32>
    %10 = vector.shape_cast %9 : vector<8xf32> to vector<8x1xf32>
    %cst_8 = arith.constant 3.906250e-03 : f32
    %11 = vector.broadcast %cst_8 : f32 to vector<8x1xf32>
    %12 = arith.mulf %10, %11 : vector<8x1xf32>
    %13 = tpu.transpose %12, [1, 0] : vector<8x1xf32> -> vector<1x8xf32>
    %c0_9 = arith.constant 0 : index
    %c0_10 = arith.constant 0 : index
    %14 = vector.load %arg4[%c0_9, %c0_10] : memref<8x32xf32, #tpu.memory_space<vmem>>, vector<8x32xf32>
    %cst_11 = arith.constant dense<0.000000e+00> : vector<1x32xf32>
    %15 = tpu.matmul %13, %14, %cst_11 {dimension_numbers = #tpu.dot_dimension_numbers<[1], [0], [0], [1], [0, 0, 1, 1], [], []>} : vector<1x8xf32>, vector<8x32xf32>, vector<1x32xf32> -> vector<1x32xf32>
    %c0_12 = arith.constant 0 : index
    %c0_13 = arith.constant 0 : index
    %16 = vector.load %arg5[%c0_12, %c0_13] : memref<1x32xf32, #tpu.memory_space<vmem>>, vector<1x32xf32>
    %17 = arith.addf %15, %16 : vector<1x32xf32>
    %cst_14 = arith.constant 0.000000e+00 : f32
    %18 = vector.broadcast %cst_14 : f32 to vector<1x32xf32>
    %19 = arith.maximumf %17, %18 : vector<1x32xf32>
    %c0_15 = arith.constant 0 : index
    %c0_16 = arith.constant 0 : index
    %20 = vector.load %arg6[%c0_15, %c0_16] : memref<32x10xf32, #tpu.memory_space<vmem>>, vector<32x10xf32>
    %cst_17 = arith.constant dense<0.000000e+00> : vector<1x10xf32>
    %21 = tpu.matmul %19, %20, %cst_17 {dimension_numbers = #tpu.dot_dimension_numbers<[1], [0], [0], [1], [0, 0, 1, 1], [], []>} : vector<1x32xf32>, vector<32x10xf32>, vector<1x10xf32> -> vector<1x10xf32>
    %c0_18 = arith.constant 0 : index
    %c0_19 = arith.constant 0 : index
    %22 = vector.load %arg7[%c0_18, %c0_19] : memref<1x10xf32, #tpu.memory_space<vmem>>, vector<1x10xf32>
    %23 = arith.addf %21, %22 : vector<1x10xf32>
    %c0_20 = arith.constant 0 : index
    %c0_21 = arith.constant 0 : index
    %24 = vector.load %arg2[%c0_20, %c0_21] : memref<8x36xf32, #tpu.memory_space<vmem>>, vector<8x36xf32>
    %c1 = arith.constant 1 : index
    %c0_22 = arith.constant 0 : index
    %c0_23 = arith.constant 0 : index
    %25 = vector.load %arg1[%c1, %c0_22, %c0_23] : memref<2x36x256xf32, #tpu.memory_space<vmem>>, vector<1x36x256xf32>
    %26 = vector.shape_cast %25 : vector<1x36x256xf32> to vector<36x256xf32>
    %cst_24 = arith.constant dense<0.000000e+00> : vector<8x256xf32>
    %27 = tpu.matmul %24, %26, %cst_24 {dimension_numbers = #tpu.dot_dimension_numbers<[1], [0], [0], [1], [0, 0, 1, 1], [], []>} : vector<8x36xf32>, vector<36x256xf32>, vector<8x256xf32> -> vector<8x256xf32>
    %c0_25 = arith.constant 0 : index
    %c0_26 = arith.constant 0 : index
    %28 = vector.load %arg3[%c0_25, %c0_26] : memref<8x1xf32, #tpu.memory_space<vmem>>, vector<8x1xf32>
    %29 = vector.broadcast %28 : vector<8x1xf32> to vector<8x256xf32>
    %30 = arith.addf %27, %29 : vector<8x256xf32>
    %cst_27 = arith.constant 0.000000e+00 : f32
    %31 = vector.broadcast %cst_27 : f32 to vector<8x256xf32>
    %32 = arith.maximumf %30, %31 : vector<8x256xf32>
    %cst_28 = arith.constant dense<0.000000e+00> : vector<8xf32>
    %33 = vector.multi_reduction <add>, %32, %cst_28 [1] : vector<8x256xf32> to vector<8xf32>
    %34 = vector.shape_cast %33 : vector<8xf32> to vector<8x1xf32>
    %cst_29 = arith.constant 3.906250e-03 : f32
    %35 = vector.broadcast %cst_29 : f32 to vector<8x1xf32>
    %36 = arith.mulf %34, %35 : vector<8x1xf32>
    %37 = tpu.transpose %36, [1, 0] : vector<8x1xf32> -> vector<1x8xf32>
    %c0_30 = arith.constant 0 : index
    %c0_31 = arith.constant 0 : index
    %38 = vector.load %arg4[%c0_30, %c0_31] : memref<8x32xf32, #tpu.memory_space<vmem>>, vector<8x32xf32>
    %cst_32 = arith.constant dense<0.000000e+00> : vector<1x32xf32>
    %39 = tpu.matmul %37, %38, %cst_32 {dimension_numbers = #tpu.dot_dimension_numbers<[1], [0], [0], [1], [0, 0, 1, 1], [], []>} : vector<1x8xf32>, vector<8x32xf32>, vector<1x32xf32> -> vector<1x32xf32>
    %c0_33 = arith.constant 0 : index
    %c0_34 = arith.constant 0 : index
    %40 = vector.load %arg5[%c0_33, %c0_34] : memref<1x32xf32, #tpu.memory_space<vmem>>, vector<1x32xf32>
    %41 = arith.addf %39, %40 : vector<1x32xf32>
    %cst_35 = arith.constant 0.000000e+00 : f32
    %42 = vector.broadcast %cst_35 : f32 to vector<1x32xf32>
    %43 = arith.maximumf %41, %42 : vector<1x32xf32>
    %c0_36 = arith.constant 0 : index
    %c0_37 = arith.constant 0 : index
    %44 = vector.load %arg6[%c0_36, %c0_37] : memref<32x10xf32, #tpu.memory_space<vmem>>, vector<32x10xf32>
    %cst_38 = arith.constant dense<0.000000e+00> : vector<1x10xf32>
    %45 = tpu.matmul %43, %44, %cst_38 {dimension_numbers = #tpu.dot_dimension_numbers<[1], [0], [0], [1], [0, 0, 1, 1], [], []>} : vector<1x32xf32>, vector<32x10xf32>, vector<1x10xf32> -> vector<1x10xf32>
    %c0_39 = arith.constant 0 : index
    %c0_40 = arith.constant 0 : index
    %46 = vector.load %arg7[%c0_39, %c0_40] : memref<1x10xf32, #tpu.memory_space<vmem>>, vector<1x10xf32>
    %47 = arith.addf %45, %46 : vector<1x10xf32>
    %48 = vector.shape_cast %23 : vector<1x10xf32> to vector<1x1x10xf32>
    %49 = vector.shape_cast %47 : vector<1x10xf32> to vector<1x1x10xf32>
    %50 = tpu.concatenate %48, %49 in 0 : vector<1x1x10xf32>, vector<1x1x10xf32> -> vector<2x1x10xf32>
    %c0_41 = arith.constant 0 : index
    %c0_42 = arith.constant 0 : index
    %c0_43 = arith.constant 0 : index
    %51 = vector.load %arg8[%c0_41, %c0_42, %c0_43] : memref<2x1x10xf32, #tpu.memory_space<vmem>>, vector<2x1x10xf32>
    tpu.vector_store %arg8[%c0_41, %c0_42, %c0_43], %50 {strides = array<i32>} : memref<2x1x10xf32, #tpu.memory_space<vmem>>, vector<2x1x10xf32>,
    return
  }
  func.func @transform_0(%arg0: i32) -> (i32, i32, i32) {
    %c0_i32 = arith.constant 0 : i32
    %c0_i32_0 = arith.constant 0 : i32
    %c0_i32_1 = arith.constant 0 : i32
    return %arg0, %c0_i32, %c0_i32_0 : i32, i32, i32
  }
  func.func @transform_1(%arg0: i32) -> (i32, i32) {
    %c0_i32 = arith.constant 0 : i32
    %c0_i32_0 = arith.constant 0 : i32
    %c0_i32_1 = arith.constant 0 : i32
    return %c0_i32, %c0_i32_0 : i32, i32
  }
  func.func @transform_2(%arg0: i32) -> (i32, i32) {
    %c0_i32 = arith.constant 0 : i32
    %c0_i32_0 = arith.constant 0 : i32
    %c0_i32_1 = arith.constant 0 : i32
    return %c0_i32, %c0_i32_0 : i32, i32
  }
  func.func @transform_3(%arg0: i32) -> (i32, i32) {
    %c0_i32 = arith.constant 0 : i32
    %c0_i32_0 = arith.constant 0 : i32
    %c0_i32_1 = arith.constant 0 : i32
    return %c0_i32, %c0_i32_0 : i32, i32
  }
  func.func @transform_4(%arg0: i32) -> (i32, i32) {
    %c0_i32 = arith.constant 0 : i32
    %c0_i32_0 = arith.constant 0 : i32
    %c0_i32_1 = arith.constant 0 : i32
    return %c0_i32, %c0_i32_0 : i32, i32
  }
  func.func @transform_5(%arg0: i32) -> (i32, i32) {
    %c0_i32 = arith.constant 0 : i32
    %c0_i32_0 = arith.constant 0 : i32
    %c0_i32_1 = arith.constant 0 : i32
    return %c0_i32, %c0_i32_0 : i32, i32
  }
  func.func @transform_6(%arg0: i32) -> (i32, i32) {
    %c0_i32 = arith.constant 0 : i32
    %c0_i32_0 = arith.constant 0 : i32
    %c0_i32_1 = arith.constant 0 : i32
    return %c0_i32, %c0_i32_0 : i32, i32
  }
  func.func @transform_7(%arg0: i32) -> (i32, i32, i32) {
    %c0_i32 = arith.constant 0 : i32
    %c0_i32_0 = arith.constant 0 : i32
    %c0_i32_1 = arith.constant 0 : i32
    return %arg0, %c0_i32, %c0_i32_0 : i32, i32, i32
  }
}

</mosaic_0001>

<bundles_post_ra>
// kernel: gradcam_net_forward.1
= control target key start
LH: loop header
LB: loop body
LE: loop exit
PB: predicated region body
PF: predicated region fallthrough
CT: control target
= control target key end

     0   :  { %vm48_vm0 = vcmask 1043456   ;;  %v406_v6 = vmov 0   ;;  %s566_s0 = inlined_call_operand.vmem [shape: f32[2,36,256], index: 0, kind: input, shape index: {}]   ;;  %s567_s1 = inlined_call_operand.vmem [shape: f32[8,36], index: 1, kind: input, shape index: {}]   ;;  %s568_s2 = inlined_call_operand.vmem [shape: f32[8,1], index: 2, kind: input, shape index: {}]   ;;  %s569_s3 = inlined_call_operand.vmem [shape: f32[8,32], index: 3, kind: input, shape index: {}]   ;;  %s570_s4 = inlined_call_operand.vmem [shape: f32[1,32], index: 4, kind: input, shape index: {}]   ;;  %s571_s5 = inlined_call_operand.vmem [shape: f32[32,10], index: 5, kind: input, shape index: {}]   ;;  %s572_s6 = inlined_call_operand.vmem [shape: f32[1,10], index: 6, kind: input, shape index: {}]   ;;  %s573_s7 = inlined_call_operand.hbm [shape: f32[2,1,10], index: 7, kind: output, shape index: {}]  }
   0x1   :  { %v36_v0 = vld [vmem:[%s566_s0 + $0x40] sm:$0xf]  ;;  %v37_v1 = vld [vmem:[%s566_s0 + $0x48] sm:$0xf]  ;;  %v34_v2 = vld [vmem:[%s566_s0 + $0x30] sm:$0xff]  ;;  %379 = vset.pattern.permute.xlu0 %v406_v6 }
   0x2   :  { %352 = vmatpush.msk.msra.mxu0 %vm48_vm0, %v36_v0  ;;  %354 = vmatpush.msk.msra.mxu1 %vm48_vm0, %v37_v1  ;;  %v35_v3 = vld [vmem:[%s566_s0 + $0x38] sm:$0xff]  ;;  %v32_v4 = vld [vmem:[%s566_s0 + $0x20] sm:$0xff]  ;;  %v33_v5 = vld [vmem:[%s566_s0 + $0x28] sm:$0xff] }
   0x3   :  { %v38_v7 = vld [vmem:[%s568_s2] sm:$0xff]  ;;  %v30_v8 = vld [vmem:[%s566_s0 + $0x10] sm:$0xff]  ;;  %v31_v9 = vld [vmem:[%s566_s0 + $0x18] sm:$0xff] }
   0x4   :  { %67 = vmatpush.msra.mxu0 %v34_v2  ;;  %87 = vmatpush.msra.mxu1 %v35_v3 }
   0x5   :  { %41 = vperm.xlu0 %379, %v38_v7  }
   0x6   :  { %12 = vsyncpa [#allocation3], 0  ;;  %68 = vmatpush.msra.mxu0 %v32_v4  ;;  %88 = vmatpush.msra.mxu1 %v33_v5  ;;  %v28_v10 = vld [vmem:[%s566_s0] sm:$0xff]  ;;  %v29_v11 = vld [vmem:[%s566_s0 + $0x8] sm:$0xff]  ;;  %vm44_vm1 = vcmask 293888   ;;  %vm135_vm2 = vcmask 64512  }
   0x7   :  { %v488_v12 = vld [vmem:[%s567_s1] sm:$0xff]  ;;  %v366_v22 = vld [vmem:[%s566_s0 + $0x90] sm:$0xf]  ;;  %v163_v29 = vld [vmem:[%s571_s5 + $0x18] sm:$0xff]  ;;  %vm165_vm3 = vcmask 261120   ;;  %vm331_vm4 = vcmask 73728  }
   0x8   :  { %69 = vmatpush.msra.mxu0 %v30_v8  ;;  %89 = vmatpush.msra.mxu1 %v31_v9  ;;  %v133_v21 = vld [vmem:[%s569_s3] sm:$0xff]  ;;  %v362_v26 = vld [vmem:[%s566_s0 + $0x70] sm:$0xff]  ;;  %v161_v32 = vld [vmem:[%s571_s5 + $0x8] sm:$0xff]  ;;  %s340_s3 = sshll.u32 %s573_s7, 4  ;;  %s408_s8 = smov 16   ;;  %s341_s3 = int_to_ptr.hbm [resolvable:$true] %s340_s3 }
   0x9   :  { %154 = vmatpush.msra.mxu2 %v133_v21  ;;  %v364_v25 = vld [vmem:[%s566_s0 + $0x80] sm:$0xff]  ;;  %v358_v28 = vld [vmem:[%s566_s0 + $0x50] sm:$0xff]  ;;  %181 = vmatpush.msra.mxu3 %v163_v29  ;;  %v367_v34 = vld [vmem:[%s566_s0 + $0x98] sm:$0xf]  ;;  %s409_s9 = smov 1  }
   0xa   :  { %70 = vmatpush.msra.mxu0 %v28_v10  ;;  %90 = vmatpush.msra.mxu1 %v29_v11  ;;  %v360_v27 = vld [vmem:[%s566_s0 + $0x60] sm:$0xff]  ;;  %v162_v30 = vld [vmem:[%s571_s5 + $0x10] sm:$0xff]  ;;  %v365_v35 = vld [vmem:[%s566_s0 + $0x88] sm:$0xff] }
   0xb   :  { %353 = vmatmul.msk.f32.vlgmr.msra.gmra.mxu0 %vm44_vm1, %v488_v12  ;;  %355 = vmatmul.msk.f32.vlgmr.msra.gmra.mxu1 %vm44_vm1, %v488_v12  ;;  %v160_v33 = vld [vmem:[%s571_s5] sm:$0xff]  ;;  %v363_v36 = vld [vmem:[%s566_s0 + $0x78] sm:$0xff]  ;;  %v361_v37 = vld [vmem:[%s566_s0 + $0x68] sm:$0xff] }
   0xc   :  { %302 = vmatpush.msrb.mxu0 %v133_v21  ;;  %368 = vmatpush.msk.msrb.mxu2 %vm48_vm0, %v366_v22  ;;  %v359_v38 = vld [vmem:[%s566_s0 + $0x58] sm:$0xff]  ;;  %v134_v39 = vld [vmem:[%s570_s4] sm:$0x1]  ;;  %s407_s0 = smov [#allocation2]  }
   0xd   :  { %323 = vmatpush.msrb.mxu1 %v163_v29  ;;  %182 = vmatpush.msra.mxu3 %v162_v30  ;;  %v164_v43 = vld [vmem:[%s572_s6] sm:$0x1]  ;;  %s338_s4 = sshll.u32 %s407_s0, 4  ;;  %s339_s4 = int_to_ptr.vmem [resolvable:$true] %s338_s4 }
   0xe   :  { %218 = vmatpush.msrb.mxu2 %v364_v25 }
   0xf   :  { %324 = vmatpush.msrb.mxu1 %v162_v30  ;;  %183 = vmatpush.msra.mxu3 %v161_v32 }
  0x10   :  { %219 = vmatpush.msrb.mxu2 %v362_v26 }
  0x11   :  { %325 = vmatpush.msrb.mxu1 %v161_v32  ;;  %184 = vmatpush.msra.mxu3 %v160_v33 }
  0x12   :  { %220 = vmatpush.msrb.mxu2 %v360_v27 }
  0x13   :  { %326 = vmatpush.msrb.mxu1 %v160_v33  ;;  %370 = vmatpush.msk.msrb.mxu3 %vm48_vm0, %v367_v34 }
  0x14   :  { %221 = vmatpush.msrb.mxu2 %v358_v28 }
  0x15   :  { %238 = vmatpush.msrb.mxu3 %v365_v35 }
  0x17   :  { %239 = vmatpush.msrb.mxu3 %v363_v36 }
  0x19   :  { %240 = vmatpush.msrb.mxu3 %v361_v37 }
  0x1b   :  { %241 = vmatpush.msrb.mxu3 %v359_v38 }
  0x77   :  { %v494_v13 = vpop.permute.xlu0 %41 }
  0x88   :  { %v72_v14 = vpop.f32.mrf.mxu0  ;;  %v92_v15 = vpop.f32.mrf.mxu1 }
  0x89   :  { %v73_v16 = vadd.f32 %v72_v14, %v494_v13  ;;  %v93_v17 = vadd.f32 %v92_v15, %v494_v13 }
  0x8b   :  { %v95_v18 = vmax.f32 %v73_v16, 0.0  ;;  %v96_v19 = vmax.f32 %v93_v17, 0.0 }
  0x8d   :  { %v97_v20 = vadd.f32 %v96_v19, %v95_v18 }
  0x8f   :  { %98 = vadd.xlane.f32.xlu0 %v97_v20 }
 0x102   :  { %v99_v23 = vpop.xlane.xlu0 %98 }
 0x103   :  { %v100_v24 = vmul.f32 0.00390625, %v99_v23 }
 0x105   :  { %101 = vxpose.xlu1.b32.start.end [1/1] (short) (narrow) %v100_v24, 8 }
 0x1a9   :  { %v117_v31 = vpop.trf.xlu1 }
 0x1aa   :  { %356 = vmatmul.msk.f32.vlgmr.msra.gmra.mxu2 %vm135_vm2, %v117_v31 }
 0x1b2   :  { %369 = vmatmul.msk.f32.vlgmr.msrb.gmra.mxu2 %vm44_vm1, %v488_v12 }
 0x22d   :  { %v156_v40 = vpop.f32.mrf.mxu2 }
 0x22e   :  { %v157_v41 = vadd.f32 %v156_v40, %v134_v39 }
 0x230   :  { %v159_v42 = vmax.f32 %v157_v41, 0.0 }
 0x232   :  { %357 = vmatmul.msk.f32.vlgmr.msra.gmra.mxu3 %vm165_vm3, %v159_v42 }
 0x235   :  { %v223_v46 = vpop.f32.mrf.mxu2 }
 0x236   :  { %v224_v47 = vadd.f32 %v223_v46, %v494_v13 }
 0x238   :  { %v246_v50 = vmax.f32 %v224_v47, 0.0 }
 0x23a   :  { %371 = vmatmul.msk.f32.vlgmr.msrb.gmra.mxu3 %vm44_vm1, %v488_v12 }
 0x2b5   :  { %v186_v44 = vpop.f32.mrf.mxu3 }
 0x2b6   :  { %v187_v45 = vadd.f32 %v186_v44, %v164_v43 }
 0x2b8   :  { %332 = vst.msk [vmem:[#allocation2] sm:$0x1] %vm331_vm4, %v187_v45 }
 0x2bd   :  { %v243_v48 = vpop.f32.mrf.mxu3 }
 0x2be   :  { %v244_v49 = vadd.f32 %v243_v48, %v494_v13 }
 0x2c0   :  { %v247_v51 = vmax.f32 %v244_v49, 0.0 }
 0x2c2   :  { %v248_v52 = vadd.f32 %v247_v51, %v246_v50 }
 0x2c4   :  { %249 = vadd.xlane.f32.xlu1 %v248_v52 }
 0x337   :  { %v250_v53 = vpop.xlane.xlu1 %249 }
 0x338   :  { %v251_v54 = vmul.f32 0.00390625, %v250_v53 }
 0x33a   :  { %252 = vxpose.xlu2.b32.start.end [1/1] (short) (narrow) %v251_v54, 8 }
 0x3d3   :  { %v268_v55 = vpop.trf.xlu2 }
 0x3d4   :  { %372 = vmatmul.msk.f32.vlgmr.msrb.gmra.mxu0 %vm135_vm2, %v268_v55 }
 0x451   :  { %v304_v56 = vpop.f32.mrf.mxu0 }
 0x452   :  { %v305_v57 = vadd.f32 %v304_v56, %v134_v39 }
 0x454   :  { %v307_v58 = vmax.f32 %v305_v57, 0.0 }
 0x456   :  { %373 = vmatmul.msk.f32.vlgmr.msrb.gmra.mxu1 %vm165_vm3, %v307_v58 }
 0x4d3   :  { %v328_v59 = vpop.f32.mrf.mxu1 }
 0x4d4   :  { %v329_v60 = vadd.f32 %v328_v59, %v164_v43 }
 0x4d6   :  { %333 = vst.msk [vmem:[#allocation2 + $0x1] sm:$0x1] %vm331_vm4, %v329_v60 }
 0x4d7   :  { %346 = dma.vmem_to_hbm [thread:$0]  %s339_s4, 32, %s341_s3, [#allocation3], %s408_s8, %s408_s8, %s409_s9  }
 0x4d8   :  { %404 = dma.done.wait [#allocation3], 32  }
 0x4d9   :  { %405 = vsyncadd [#allocation3], 4294967264 }
 0x4da   :  { %351 = vsyncpa [#allocation3], 1 }

</bundles_post_ra>
